<compile_context>
chip_gen: v6e
topology: v6e:2x2x1
jax: 0.10.0
libtpu: 0.0.40
codegen_flags: <defaults>
</compile_context>

<pallas_src>
import functools

import jax
import jax.numpy as jnp
from jax.experimental import pallas as pl
from jax.experimental.pallas import tpu as pltpu


def _round_up(x, m):
    return (x + m - 1) // m * m


def _conv_relu_kernel(x_ref, w_ref, b_ref, o_ref, col_ref, *,
                      BB, Np, Wp, KH, KW, Cin_pad):
    """One grid step == one batch block of BB images, ONE MXU contraction.

    x_ref  : (BB, Cin_pad, L)        flattened, zero-padded images (MXU dtype)
    w_ref  : (CoutP, KH*KW*Cin_pad)  weights, rows ordered (kh, kw, cin)
    b_ref  : (CoutP, 1)              bias (float32)
    o_ref  : (BB, CoutP, Np)         output, Np = round_up(H_out*Wp, 128)
    col_ref: (KH*KW*Cin_pad, BB*Np)  VMEM scratch: the im2col operand
    """
    # Implicit im2col: every tap is a contiguous window of the flattened
    # padded image shifted by kh*Wp + kw.  All destination offsets are static
    # and tile-aligned (Cin_pad % sublane_tile == 0, Np % 128 == 0) so these
    # are full-tile, unmasked stores.  No dtype cast here (done once in the
    # wrapper).
    for b in range(BB):                      # BB is small by construction
        for kh in range(KH):
            for kw in range(KW):
                t = kh * KW + kw
                start = kh * Wp + kw         # static python int
                col_ref[t * Cin_pad:(t + 1) * Cin_pad,
                        b * Np:(b + 1) * Np] = x_ref[b, :, start:start + Np]

    # One MXU contraction for the whole batch block:
    #   (CoutP, KH*KW*Cin_pad) @ (KH*KW*Cin_pad, BB*Np) -> f32
    acc = jnp.dot(w_ref[...], col_ref[...],
                  preferred_element_type=jnp.float32)

    # Fused bias + ReLU, kept in float32.
    acc = jnp.maximum(acc + b_ref[...], 0.0)

    # Lane-aligned (b*Np is a multiple of 128) per-image output stores.
    for b in range(BB):
        o_ref[b] = acc[:, b * Np:(b + 1) * Np].astype(o_ref.dtype)


def _pick_batch_block(B, per_image_bytes, fixed_bytes, budget_bytes):
    """Largest divisor of B whose total VMEM working set stays under budget,
    capped so the batch grid has >= 2 steps (v7x two-TensorCore sharding)."""
    avail = max(budget_bytes - fixed_bytes, per_image_bytes)
    bb = max(1, min(B, avail // max(per_image_bytes, 1)))
    if B >= 2:
        bb = min(bb, B // 2)
    bb = max(1, bb)
    while B % bb:
        bb -= 1
    return bb


def conv_relu(x_nchw, weight, bias, padding, *, compute_dtype=jnp.float32):
    """Conv2d(stride=1, dilation=1, padding=padding) + ReLU.  NCHW in/out.

    x_nchw : (B, Cin, H, W)
    weight : (Cout, Cin, KH, KW)   (PyTorch Conv2d layout)
    bias   : (Cout,)
    compute_dtype=jnp.bfloat16 gives full-rate MXU operands on v5e/v6e/v7x;
    accumulation, bias-add and ReLU always stay float32.
    """
    B, Cin, H, W = x_nchw.shape
    Cout, Cin_w, KH, KW = weight.shape
    assert Cin_w == Cin
    # This kernel implements the module's defaults only: stride=1, dilation=1.
    H_out = H + 2 * padding - KH + 1
    W_out = W + 2 * padding - KW + 1
    Hp, Wp = H + 2 * padding, W + 2 * padding
    assert H_out >= 1 and W_out >= 1

    c_bytes = jnp.dtype(compute_dtype).itemsize
    out_dtype = x_nchw.dtype
    o_bytes = jnp.dtype(out_dtype).itemsize

    # Alignment: sublane tile for the MXU operand dtype, lane tile = 128.
    sub = 8 if c_bytes == 4 else (16 if c_bytes == 2 else 32)
    Cin_pad = _round_up(Cin, sub)
    CoutP = _round_up(Cout, 8)               # f32 accumulator sublane tile
    Np = _round_up(H_out * Wp, 128)          # lane-dense per-image columns
    Ktot = KH * KW * Cin_pad

    # Every tap window [kh*Wp+kw, kh*Wp+kw+Np) must stay inside the flattened
    # padded image -- pad its length L accordingly (this replaces the fragile
    # "+1 extra bottom row" coupling of the previous version).
    max_start = (KH - 1) * Wp + (KW - 1)
    L = _round_up(max(Hp * Wp, max_start + Np), 128)

    # ---- wrapper-side prep (one pass each) ----
    # Spatial zero-pad + channel-pad to the sublane tile, cast ONCE to the
    # MXU operand dtype, flatten H,W -> 1-D and pad the tail.
    x_pad = jnp.pad(x_nchw, ((0, 0), (0, Cin_pad - Cin),
                             (padding, padding), (padding, padding)))
    x_flat = x_pad.astype(compute_dtype).reshape(B, Cin_pad, Hp * Wp)
    x_flat = jnp.pad(x_flat, ((0, 0), (0, 0), (0, L - Hp * Wp)))

    # Weights (Cout, Cin, KH, KW) -> (CoutP, KH*KW*Cin_pad), rows (kh, kw, cin)
    # to match the tap stacking order in the kernel.  Padded rows are zero.
    w_t = jnp.transpose(weight, (0, 2, 3, 1))                 # (Cout,KH,KW,Cin)
    w_t = jnp.pad(w_t, ((0, CoutP - Cout), (0, 0), (0, 0), (0, Cin_pad - Cin)))
    w2d = w_t.reshape(CoutP, Ktot).astype(compute_dtype)
    b2d = jnp.pad(bias, (0, CoutP - Cout)).reshape(CoutP, 1).astype(jnp.float32)

    # ---- VMEM budgeting: count everything that lives in VMEM per step ----
    per_image = (2 * Cin_pad * L * c_bytes       # double-buffered input block
                 + 2 * CoutP * Np * o_bytes      # double-buffered output block
                 + Ktot * Np * c_bytes           # col scratch
                 + CoutP * Np * 4)               # f32 accumulator
    fixed = 2 * CoutP * Ktot * c_bytes + 2 * CoutP * 4        # weights + bias
    BB = _pick_batch_block(B, per_image, fixed, budget_bytes=24 << 20)

    need = BB * per_image + fixed
    # Explicit scoped-VMEM limit: generous headroom but well under v7x 64 MiB.
    vmem_limit = int(min(max(need * 3 // 2, 32 << 20), 48 << 20))

    kernel = functools.partial(
        _conv_relu_kernel, BB=BB, Np=Np, Wp=Wp, KH=KH, KW=KW, Cin_pad=Cin_pad)

    out_flat = pl.pallas_call(
        kernel,
        out_shape=jax.ShapeDtypeStruct((B, CoutP, Np), out_dtype),
        grid_spec=pltpu.PrefetchScalarGridSpec(
            num_scalar_prefetch=0,
            grid=(B // BB,),
            in_specs=[
                # one batch block of flattened padded images per step
                pl.BlockSpec((BB, Cin_pad, L), lambda i: (i, 0, 0)),
                # full weights / bias resident every step
                pl.BlockSpec((CoutP, Ktot), lambda i: (0, 0)),
                pl.BlockSpec((CoutP, 1), lambda i: (0, 0)),
            ],
            out_specs=pl.BlockSpec((BB, CoutP, Np), lambda i: (i, 0, 0)),
            scratch_shapes=[pltpu.VMEM((Ktot, BB * Np), compute_dtype)],
        ),
        compiler_params=pltpu.CompilerParams(
            dimension_semantics=("parallel",),
            vmem_limit_bytes=vmem_limit),
    )(x_flat, w2d, b2d)

    # Strip channel padding and the Np / Wp "wrap" garbage columns; the
    # reshape is a free contiguous reshape.
    out = out_flat[:, :Cout, :H_out * Wp]
    out = out.reshape(B, Cout, H_out, Wp)[:, :, :, :W_out]
    return out


if __name__ == "__main__":
    # Module config: ConvRelu(in_channels=4, out_channels=8, kernel=3, padding=1)
    B, Cin, H, W = 2, 4, 16, 16
    Cout, K, pad = 8, 3, 1

    key = jax.random.PRNGKey(0)
    kx, kw_, kb = jax.random.split(key, 3)
    x = jax.random.normal(kx, (B, Cin, H, W), dtype=jnp.float32)
    # Deterministic "kaiming-uniform-like" init (synthetic; not a checkpoint load).
    fan_in = Cin * K * K
    bound = 1.0 / jnp.sqrt(fan_in)
    weight = jax.random.uniform(kw_, (Cout, Cin, K, K), minval=-bound,
                                maxval=bound, dtype=jnp.float32)
    bias = jax.random.uniform(kb, (Cout,), minval=-bound, maxval=bound,
                              dtype=jnp.float32)

    # Reference: XLA's native conv + bias + relu.
    ref = jax.lax.conv_general_dilated(
        x, weight, window_strides=(1, 1), padding=[(pad, pad), (pad, pad)],
        dimension_numbers=("NCHW", "OIHW", "NCHW"),
    ) + bias.reshape(1, Cout, 1, 1)
    ref = jnp.maximum(ref, 0.0)

    # float32 MXU-operand path (exact module semantics).
    out = jax.block_until_ready(conv_relu(x, weight, bias, pad))
    assert out.shape == (B, Cout, H, W)
    assert jnp.allclose(out, ref, atol=1e-4, rtol=1e-4)

    # bfloat16 MXU-operand path (f32 accumulation) -- looser tolerance.
    out_bf16 = jax.block_until_ready(
        conv_relu(x, weight, bias, pad, compute_dtype=jnp.bfloat16))
    assert out_bf16.shape == (B, Cout, H, W)
    assert jnp.allclose(out_bf16, ref, atol=0.08, rtol=0.08)

    print("KERNEL_OK")
</pallas_src>

<mosaic_0001>
module attributes {stable_mosaic.version = 11 : i64} {
  func.func @_conv_relu_kernel(%arg0: i32, %arg1: memref<1x8x512xf32, #tpu.memory_space<vmem>>, %arg2: memref<8x72xf32, #tpu.memory_space<vmem>>, %arg3: memref<8x1xf32, #tpu.memory_space<vmem>>, %arg4: memref<1x8x384xf32, #tpu.memory_space<vmem>>, %arg5: memref<72x384xf32, #tpu.memory_space<vmem>>) attributes {dimension_semantics = [#tpu.dimension_semantics<parallel>], iteration_bounds = array<i64: 2>, scalar_prefetch = 0 : i64, scratch_operands = 1 : i64, tpu.core_type = #tpu.core_type<tc>, window_params = [{transform_indices = @transform_0, window_bounds = array<i64: 1, 8, 512>}, {pipeline_mode = #tpu.pipeline_mode<synchronous>, transform_indices = @transform_1, window_bounds = array<i64: 8, 72>}, {pipeline_mode = #tpu.pipeline_mode<synchronous>, transform_indices = @transform_2, window_bounds = array<i64: 8, 1>}, {transform_indices = @transform_3, window_bounds = array<i64: 1, 8, 384>}]} {
    %c0 = arith.constant 0 : index
    %c0_0 = arith.constant 0 : index
    %c0_1 = arith.constant 0 : index
    %0 = vector.load %arg1[%c0, %c0_0, %c0_1] : memref<1x8x512xf32, #tpu.memory_space<vmem>>, vector<1x8x384xf32>
    %1 = vector.shape_cast %0 : vector<1x8x384xf32> to vector<8x384xf32>
    %c0_2 = arith.constant 0 : index
    %c0_3 = arith.constant 0 : index
    %2 = vector.load %arg5[%c0_2, %c0_3] : memref<72x384xf32, #tpu.memory_space<vmem>>, vector<8x384xf32>
    tpu.vector_store %arg5[%c0_2, %c0_3], %1 {strides = array<i32>} : memref<72x384xf32, #tpu.memory_space<vmem>>, vector<8x384xf32>,
    %c0_4 = arith.constant 0 : index
    %c0_5 = arith.constant 0 : index
    %c1 = arith.constant 1 : index
    %3 = vector.load %arg1[%c0_4, %c0_5, %c1] : memref<1x8x512xf32, #tpu.memory_space<vmem>>, vector<1x8x384xf32>
    %4 = vector.shape_cast %3 : vector<1x8x384xf32> to vector<8x384xf32>
    %c8 = arith.constant 8 : index
    %c0_6 = arith.constant 0 : index
    %5 = vector.load %arg5[%c8, %c0_6] : memref<72x384xf32, #tpu.memory_space<vmem>>, vector<8x384xf32>
    tpu.vector_store %arg5[%c8, %c0_6], %4 {strides = array<i32>} : memref<72x384xf32, #tpu.memory_space<vmem>>, vector<8x384xf32>,
    %c0_7 = arith.constant 0 : index
    %c0_8 = arith.constant 0 : index
    %c2 = arith.constant 2 : index
    %6 = vector.load %arg1[%c0_7, %c0_8, %c2] : memref<1x8x512xf32, #tpu.memory_space<vmem>>, vector<1x8x384xf32>
    %7 = vector.shape_cast %6 : vector<1x8x384xf32> to vector<8x384xf32>
    %c16 = arith.constant 16 : index
    %c0_9 = arith.constant 0 : index
    %8 = vector.load %arg5[%c16, %c0_9] : memref<72x384xf32, #tpu.memory_space<vmem>>, vector<8x384xf32>
    tpu.vector_store %arg5[%c16, %c0_9], %7 {strides = array<i32>} : memref<72x384xf32, #tpu.memory_space<vmem>>, vector<8x384xf32>,
    %c0_10 = arith.constant 0 : index
    %c0_11 = arith.constant 0 : index
    %c18 = arith.constant 18 : index
    %9 = vector.load %arg1[%c0_10, %c0_11, %c18] : memref<1x8x512xf32, #tpu.memory_space<vmem>>, vector<1x8x384xf32>
    %10 = vector.shape_cast %9 : vector<1x8x384xf32> to vector<8x384xf32>
    %c24 = arith.constant 24 : index
    %c0_12 = arith.constant 0 : index
    %11 = vector.load %arg5[%c24, %c0_12] : memref<72x384xf32, #tpu.memory_space<vmem>>, vector<8x384xf32>
    tpu.vector_store %arg5[%c24, %c0_12], %10 {strides = array<i32>} : memref<72x384xf32, #tpu.memory_space<vmem>>, vector<8x384xf32>,
    %c0_13 = arith.constant 0 : index
    %c0_14 = arith.constant 0 : index
    %c19 = arith.constant 19 : index
    %12 = vector.load %arg1[%c0_13, %c0_14, %c19] : memref<1x8x512xf32, #tpu.memory_space<vmem>>, vector<1x8x384xf32>
    %13 = vector.shape_cast %12 : vector<1x8x384xf32> to vector<8x384xf32>
    %c32 = arith.constant 32 : index
    %c0_15 = arith.constant 0 : index
    %14 = vector.load %arg5[%c32, %c0_15] : memref<72x384xf32, #tpu.memory_space<vmem>>, vector<8x384xf32>
    tpu.vector_store %arg5[%c32, %c0_15], %13 {strides = array<i32>} : memref<72x384xf32, #tpu.memory_space<vmem>>, vector<8x384xf32>,
    %c0_16 = arith.constant 0 : index
    %c0_17 = arith.constant 0 : index
    %c20 = arith.constant 20 : index
    %15 = vector.load %arg1[%c0_16, %c0_17, %c20] : memref<1x8x512xf32, #tpu.memory_space<vmem>>, vector<1x8x384xf32>
    %16 = vector.shape_cast %15 : vector<1x8x384xf32> to vector<8x384xf32>
    %c40 = arith.constant 40 : index
    %c0_18 = arith.constant 0 : index
    %17 = vector.load %arg5[%c40, %c0_18] : memref<72x384xf32, #tpu.memory_space<vmem>>, vector<8x384xf32>
    tpu.vector_store %arg5[%c40, %c0_18], %16 {strides = array<i32>} : memref<72x384xf32, #tpu.memory_space<vmem>>, vector<8x384xf32>,
    %c0_19 = arith.constant 0 : index
    %c0_20 = arith.constant 0 : index
    %c36 = arith.constant 36 : index
    %18 = vector.load %arg1[%c0_19, %c0_20, %c36] : memref<1x8x512xf32, #tpu.memory_space<vmem>>, vector<1x8x384xf32>
    %19 = vector.shape_cast %18 : vector<1x8x384xf32> to vector<8x384xf32>
    %c48 = arith.constant 48 : index
    %c0_21 = arith.constant 0 : index
    %20 = vector.load %arg5[%c48, %c0_21] : memref<72x384xf32, #tpu.memory_space<vmem>>, vector<8x384xf32>
    tpu.vector_store %arg5[%c48, %c0_21], %19 {strides = array<i32>} : memref<72x384xf32, #tpu.memory_space<vmem>>, vector<8x384xf32>,
    %c0_22 = arith.constant 0 : index
    %c0_23 = arith.constant 0 : index
    %c37 = arith.constant 37 : index
    %21 = vector.load %arg1[%c0_22, %c0_23, %c37] : memref<1x8x512xf32, #tpu.memory_space<vmem>>, vector<1x8x384xf32>
    %22 = vector.shape_cast %21 : vector<1x8x384xf32> to vector<8x384xf32>
    %c56 = arith.constant 56 : index
    %c0_24 = arith.constant 0 : index
    %23 = vector.load %arg5[%c56, %c0_24] : memref<72x384xf32, #tpu.memory_space<vmem>>, vector<8x384xf32>
    tpu.vector_store %arg5[%c56, %c0_24], %22 {strides = array<i32>} : memref<72x384xf32, #tpu.memory_space<vmem>>, vector<8x384xf32>,
    %c0_25 = arith.constant 0 : index
    %c0_26 = arith.constant 0 : index
    %c38 = arith.constant 38 : index
    %24 = vector.load %arg1[%c0_25, %c0_26, %c38] : memref<1x8x512xf32, #tpu.memory_space<vmem>>, vector<1x8x384xf32>
    %25 = vector.shape_cast %24 : vector<1x8x384xf32> to vector<8x384xf32>
    %c64 = arith.constant 64 : index
    %c0_27 = arith.constant 0 : index
    %26 = vector.load %arg5[%c64, %c0_27] : memref<72x384xf32, #tpu.memory_space<vmem>>, vector<8x384xf32>
    tpu.vector_store %arg5[%c64, %c0_27], %25 {strides = array<i32>} : memref<72x384xf32, #tpu.memory_space<vmem>>, vector<8x384xf32>,
    %c0_28 = arith.constant 0 : index
    %c0_29 = arith.constant 0 : index
    %27 = vector.load %arg2[%c0_28, %c0_29] : memref<8x72xf32, #tpu.memory_space<vmem>>, vector<8x72xf32>
    %c0_30 = arith.constant 0 : index
    %c0_31 = arith.constant 0 : index
    %28 = vector.load %arg5[%c0_30, %c0_31] : memref<72x384xf32, #tpu.memory_space<vmem>>, vector<72x384xf32>
    %cst = arith.constant dense<0.000000e+00> : vector<8x384xf32>
    %29 = tpu.matmul %27, %28, %cst {dimension_numbers = #tpu.dot_dimension_numbers<[1], [0], [0], [1], [0, 0, 1, 1], [], []>} : vector<8x72xf32>, vector<72x384xf32>, vector<8x384xf32> -> vector<8x384xf32>
    %c0_32 = arith.constant 0 : index
    %c0_33 = arith.constant 0 : index
    %30 = vector.load %arg3[%c0_32, %c0_33] : memref<8x1xf32, #tpu.memory_space<vmem>>, vector<8x1xf32>
    %31 = vector.broadcast %30 : vector<8x1xf32> to vector<8x384xf32>
    %32 = arith.addf %29, %31 : vector<8x384xf32>
    %cst_34 = arith.constant 0.000000e+00 : f32
    %33 = vector.broadcast %cst_34 : f32 to vector<8x384xf32>
    %34 = arith.maximumf %32, %33 : vector<8x384xf32>
    %c0_35 = arith.constant 0 : index
    %c0_36 = arith.constant 0 : index
    %c0_37 = arith.constant 0 : index
    %35 = vector.load %arg4[%c0_35, %c0_36, %c0_37] : memref<1x8x384xf32, #tpu.memory_space<vmem>>, vector<1x8x384xf32>
    %36 = vector.shape_cast %35 : vector<1x8x384xf32> to vector<8x384xf32>
    %37 = vector.shape_cast %34 : vector<8x384xf32> to vector<1x8x384xf32>
    tpu.vector_store %arg4[%c0_35, %c0_36, %c0_37], %37 {strides = array<i32>} : memref<1x8x384xf32, #tpu.memory_space<vmem>>, vector<1x8x384xf32>,
    return
  }
  func.func @transform_0(%arg0: i32) -> (i32, i32, i32) {
    %c0_i32 = arith.constant 0 : i32
    %c0_i32_0 = arith.constant 0 : i32
    %c0_i32_1 = arith.constant 0 : i32
    return %arg0, %c0_i32, %c0_i32_0 : i32, i32, i32
  }
  func.func @transform_1(%arg0: i32) -> (i32, i32) {
    %c0_i32 = arith.constant 0 : i32
    %c0_i32_0 = arith.constant 0 : i32
    %c0_i32_1 = arith.constant 0 : i32
    return %c0_i32, %c0_i32_0 : i32, i32
  }
  func.func @transform_2(%arg0: i32) -> (i32, i32) {
    %c0_i32 = arith.constant 0 : i32
    %c0_i32_0 = arith.constant 0 : i32
    %c0_i32_1 = arith.constant 0 : i32
    return %c0_i32, %c0_i32_0 : i32, i32
  }
  func.func @transform_3(%arg0: i32) -> (i32, i32, i32) {
    %c0_i32 = arith.constant 0 : i32
    %c0_i32_0 = arith.constant 0 : i32
    %c0_i32_1 = arith.constant 0 : i32
    return %arg0, %c0_i32, %c0_i32_0 : i32, i32, i32
  }
}

</mosaic_0001>

<bundles_post_ra>
// kernel: tpu_custom_call.1
= control target key start
LH: loop header
LB: loop body
LE: loop exit
PB: predicated region body
PF: predicated region fallthrough
CT: control target
= control target key end

     0   :  { %8 = vsyncpa [#allocation4], 0  ;;  %s1119_s0 = inlined_call_operand.hbm [shape: f32[2,8,512], index: 0, kind: input, shape index: {}]   ;;  %s1120_s1 = inlined_call_operand.vmem [shape: f32[8,72], index: 1, kind: input, shape index: {}]   ;;  %s1121_s2 = inlined_call_operand.vmem [shape: f32[8,1], index: 2, kind: input, shape index: {}]   ;;  %s1122_s3 = inlined_call_operand.hbm [shape: f32[2,8,384], index: 3, kind: output, shape index: {}]  }
   0x1   :  { %10 = vsyncpa [#allocation4 + $0x1], 0 }
   0x2   :  { %11 = vsyncpa [#allocation5], 0 }
   0x3   :  { %13 = vsyncpa [#allocation5 + $0x1], 0  ;;  %s903_s12 = smov 0   ;;  %s905_s13 = smov 0  }
   0x4   :  { %s907_s14 = smov 0   ;;  %s909_s15 = smov 0  }
   0x5 LB: > { %s924_s16 = sadd.s32 4294967295, %s868_s15   ;;  %s671_s17 = sadd.s32 4294967294, %s868_s15   ;;  %s868_s15 = sphi %s909_s15, %s1139_s15   ;;  %s864_s14 = sphi %s907_s14, %s1138_s14   ;;  %s860_s13 = sphi %s905_s13, %s1137_s13   ;;  %s856_s12 = sphi %s903_s12, %s1136_s12  }
   0x6   : > { %s928_s18 = sadd.s32 1, %s868_s15   ;;  %s26_s19 = sadd.s32 1, %s864_s14 }
   0x7   : > { %s23_s20 = ssub.s32 %s868_s15, %s928_s18  ;;  %p33_p0 = scmp.ne.s32.totalorder %s864_s14, %s860_s13 }
   0x8   : > { %p24_p1 = scmp.eq.s32.totalorder %s23_s20, 0  ;;  %p34_p2 = scmp.eq.s32.totalorder %s868_s15, 0 }
   0x9   : > { %p39_p3 = scmp.ne.s32.totalorder %s860_s13, %s856_s12  ;;  %p40_p4 = scmp.eq.s32.totalorder %s924_s16, 0 }
   0xa   : > { %s940_s21 = scalar_select %p24_p1, %s864_s14, %s26_s19  }
   0xb   : > { %p942_p5 = por %p34_p2, %p33_p0  ;;  %p946_p6 = por %p40_p4, %p39_p3 }
   0xc   : > { %p105_p7 = scmp.eq.s32.totalorder %s924_s16, 1  ;;  %p111_p8 = scmp.eq.s32.totalorder %s671_s17, 1 }
   0xd   : > { %s1126_s23 = scalar_select %p946_p6, 1, 0 }
   0xe   : > { %p730_p10 = scmp.lt.s32.totalorder %s868_s15, 2  ;;  %p953_p11 = por %p105_p7, %p33_p0 }
   0xf   : > { %p957_p12 = por %p111_p8, %p39_p3  ;;  %s137_s26 = sand.u32 1, %s864_s14  }
  0x10   : > { %s1127_s24 = scalar_select %p953_p11, 1, 0 }
  0x11   : > { %s1128_s25 = scalar_select %p957_p12, 1, 0 }
  0x12   : > { %s684_s27 = sshll.u32 %s868_s15, 9  ;;  %s674_s28 = sshll.u32 %s137_s26, 5 }
  0x13   : > { %s966_s4 = scalar_lea.hbm %s1119_s0, %s684_s27  ;;  %s141_s5 = scalar_lea.vmem [#allocation3], %s674_s28 }
  0x14   : > { %s149_s6 = sshll.u32 %s141_s5, 4  ;;  %p970_p13 = pnand %p730_p10, %p942_p5  ;;  %s974_s6 = int_to_ptr.vmem [resolvable:$true] %s149_s6 }
  0x15   : > { %s138_s8 = scalar_lea.sflag [#allocation4], %s137_s26  ;;  %s776_s9 = scalar_lea.hbm %s966_s4, 512 }
  0x16   : > { %p777_p2 = scmp.ne.s32.totalorder %s966_s4, %s776_s9  ;;  %p778_p3 = pneg %p970_p13 }
  0x17   : > { %s781_s17 = scalar_lea.hbm %s1119_s0, 1024  ;;  %p782_p5 = scmp.lt.s32.totalorder %s966_s4, %s1119_s0 }
  0x18   : > { %p779_p4 = pnand %p778_p3, %p777_p2  ;;  %p783_p8 = scmp.lt.s32.totalorder %s781_s17, %s776_s9 }
  0x1a   : > { %p780_p7 = pneg %p779_p4  ;;  %p784_p10 = por %p783_p8, %p782_p5 }
  0x1c   : > { %p785_p9 = pnand %p784_p10, %p780_p7 }
  0x1e   : > { %788 = shalt.err (!%p785_p9)
}
  0x1f   : > { %s789_s22 = scalar_lea.vmem %s974_s6, 512  ;;  %s870_s26 = smov [#allocation3]  }
  0x20   : > { %p790_p0 = scmp.ne.s32.totalorder %s974_s6, %s789_s22  ;;  %s794_s27 = sshll.u32 %s870_s26, 4  ;;  %s795_s27 = int_to_ptr.vmem [resolvable:$false] %s794_s27 }
  0x21   : > { %s796_s28 = scalar_lea.vmem %s795_s27, 1024  ;;  %p797_p4 = scmp.lt.s32.totalorder %s974_s6, %s795_s27 }
  0x22   : > { %p792_p1 = pnand %p790_p0, %p778_p3  ;;  %p798_p12 = scmp.lt.s32.totalorder %s796_s28, %s789_s22 }
  0x24   : > { %p793_p2 = pneg %p792_p1  ;;  %p799_p11 = por %p798_p12, %p797_p4 }
  0x26   : > { %p800_p6 = pnand %p799_p11, %p793_p2 }
  0x28   : > { %803 = shalt.err (!%p800_p6)
}
  0x29   : > { %725 = dma.hbm_to_vmem [thread:$0]  (!%p970_p13), %s966_s4, 512, %s974_s6, %s138_s8  }
  0x2a   : > { %p1130_p9 = scmp.lt.s32.totalorder %s868_s15, 3  ;;  %p1131_p7 = scmp.ge.s32.totalorder %s868_s15, 1 }
  0x2c   : > { %p155_p0 = pnand %p1131_p7, %p1130_p9 }
  0x2d   : > { %s1001_s29 = sand.u32 (!%p155_p0), 1, %s860_s13   ;;  %p1132_p6 = scmp.ne.s32.totalorder (!%p155_p0), %s1126_s23, 0 }
  0x2e   : > { %158 = sbr.rel (%p155_p0) target bundleno = 445 (0x1bd), region = 32  ;;  %s678_s30 = sshll.u32 (!%p155_p0), %s1001_s29, 5 }
  0x2f   : > { %s161_s5 = scalar_lea.sflag (!%p155_p0), [#allocation4], %s1001_s29  ;;  %s164_s9 = scalar_lea.vmem (!%p155_p0), [#allocation3], %s678_s30 }
  0x33   : > { %847 = dma.done.wait (%p1132_p6), %s161_s5, 512  }
  0x34   : > { %849 = vsyncadd (%p1132_p6), %s161_s5, 4294966784  ;;  %v1009_v0 = vld [vmem:[%s164_s9 + $0x8] sm:$0xff]  ;;  %v1011_v1 = vld [vmem:[%s164_s9] sm:$0xff]  ;;  %v871_v2 = vmov 0.0   ;;  %s872_s4 = smov 90   ;;  %s873_s23 = smov 91  }
  0x35   : > { %695 = vmatprep.subr.mxu1 %v871_v2  ;;  %503 = vmatprep.mubr.f32.mxu0 %v871_v2  ;;  %v1017_v3 = vld [vmem:[%s164_s9 + $0x10] sm:$0xff]  ;;  %v378_v4 = vld [vmem:[%s164_s9 + $0x18] sm:$0xff]  ;;  %s874_s6 = smov 92   ;;  %s875_s7 = smov 108   ;;  %vm880_vm0 = vmmov 0   ;;  %v881_v5 = vmov 0  }
  0x36   : > { %385 = vrot.lane.b32.xlu0 %v1009_v0, %s872_s4  ;;  %383 = vrot.lane.b32.xlu1 %v1011_v1, %s872_s4  ;;  %s876_s8 = smov 109   ;;  %s877_s10 = smov 110   ;;  %v429_v6 = vld [vmem:[%s1121_s2] sm:$0xff]  ;;  %vm391_vm1 = vcmask 736256   ;;  %vm365_vm2 = vcmask 744448   ;;  %vm339_vm3 = vcmask 752640  }
  0x37   : > { %s878_s11 = smov 126   ;;  %s879_s17 = smov 127   ;;  %713 = vmatprep.mubr.msk.f32.mxu1 %vm880_vm0, %v871_v2  ;;  %775 = vset.pattern.permute.xlu0 %v881_v5  ;;  %vm313_vm4 = vcmask 883712   ;;  %vm287_vm5 = vcmask 891904   ;;  %vm261_vm6 = vcmask 900096   ;;  %vm235_vm7 = vcmask 1031168  }
  0x38   : > { %vm209_vm8 = vcmask 1039360   ;;  %v401_v59 = vld [vmem:[%s1120_s1] sm:$0xff]  ;;  %vm435_vm9 = vcmask 588800   ;;  %s716_s27 = smul.u32 24, %s1001_s29  ;;  %p1133_p12 = scmp.ne.s32.totalorder %s1127_s24, 0 }
  0x39   : > { %s717_s28 = smul.u32 384, %s924_s16  ;;  %s882_s16 = smov [#allocation6]  }
  0x3a   : > { %387 = vrot.lane.b32.xlu0 %v1017_v3, %s872_s4  ;;  %359 = vrot.lane.b32.xlu1 %v1009_v0, %s873_s23  ;;  %s186_s30 = scalar_lea.vmem [#allocation6], %s716_s27 }
  0x3b   : > { %s601_s5 = sshll.u32 %s186_s30, 4  ;;  %s602_s5 = int_to_ptr.vmem [resolvable:$true] %s601_s5 }
  0x3e   : > { %361 = vrot.lane.b32.xlu0 %v1017_v3, %s873_s23  ;;  %357 = vrot.lane.b32.xlu1 %v1011_v1, %s873_s23 }
  0x42   : > { %389 = vrot.lane.b32.xlu0 %v378_v4, %s872_s4  ;;  %333 = vrot.lane.b32.xlu1 %v1009_v0, %s874_s6 }
  0x46   : > { %335 = vrot.lane.b32.xlu0 %v1017_v3, %s874_s6  ;;  %331 = vrot.lane.b32.xlu1 %v1011_v1, %s874_s6 }
  0x4a   : > { %363 = vrot.lane.b32.xlu0 %v378_v4, %s873_s23  ;;  %307 = vrot.lane.b32.xlu1 %v1009_v0, %s875_s7  ;;  %s599_s23 = scalar_lea.hbm %s1122_s3, %s717_s28 }
  0x4e   : > { %309 = vrot.lane.b32.xlu0 %v1017_v3, %s875_s7  ;;  %305 = vrot.lane.b32.xlu1 %v1011_v1, %s875_s7 }
  0x52   : > { %337 = vrot.lane.b32.xlu0 %v378_v4, %s874_s6  ;;  %281 = vrot.lane.b32.xlu1 %v1009_v0, %s876_s8  ;;  %s587_s6 = scalar_lea.sflag [#allocation5], %s1001_s29 }
  0x56   : > { %283 = vrot.lane.b32.xlu0 %v1017_v3, %s876_s8  ;;  %279 = vrot.lane.b32.xlu1 %v1011_v1, %s876_s8 }
  0x5a   : > { %311 = vrot.lane.b32.xlu0 %v378_v4, %s875_s7  ;;  %255 = vrot.lane.b32.xlu1 %v1009_v0, %s877_s10  ;;  %s804_s7 = scalar_lea.vmem %s602_s5, 384 }
  0x5b   : > { %p805_p11 = scmp.ne.s32.totalorder %s602_s5, %s804_s7 }
  0x5d   : > { %p806_p13 = pnand %p805_p11, %p1133_p12 }
  0x5e   : > { %257 = vrot.lane.b32.xlu0 %v1017_v3, %s877_s10  ;;  %253 = vrot.lane.b32.xlu1 %v1011_v1, %s877_s10 }
  0x5f   : > { %p807_p1 = pneg %p806_p13 }
  0x62   : > { %285 = vrot.lane.b32.xlu0 %v378_v4, %s876_s8  ;;  %229 = vrot.lane.b32.xlu1 %v1009_v0, %s878_s11  ;;  %s808_s8 = sshll.u32 %s882_s16, 4  ;;  %s809_s8 = int_to_ptr.vmem [resolvable:$false] %s808_s8 }
  0x63   : > { %p811_p3 = scmp.lt.s32.totalorder %s602_s5, %s809_s8 }
  0x66   : > { %231 = vrot.lane.b32.xlu0 %v1017_v3, %s878_s11  ;;  %227 = vrot.lane.b32.xlu1 %v1011_v1, %s878_s11 }
  0x6a   : > { %259 = vrot.lane.b32.xlu0 %v378_v4, %s877_s10  ;;  %203 = vrot.lane.b32.xlu1 %v1009_v0, %s879_s17  ;;  %s810_s10 = scalar_lea.vmem %s809_s8, 768 }
  0x6b   : > { %p812_p5 = scmp.lt.s32.totalorder %s810_s10, %s804_s7 }
  0x6d   : > { %p813_p8 = por %p812_p5, %p811_p3 }
  0x6e   : > { %205 = vrot.lane.b32.xlu0 %v1017_v3, %s879_s17  ;;  %201 = vrot.lane.b32.xlu1 %v1011_v1, %s879_s17 }
  0x6f   : > { %p814_p10 = pnand %p813_p8, %p807_p1 }
  0x72   : > { %233 = vrot.lane.b32.xlu0 %v378_v4, %s878_s11  ;;  %207 = vrot.lane.b32.xlu1 %v378_v4, %s879_s17 }
  0x76   : > { %432 = vperm.xlu0 %775, %v429_v6  }
  0xa8   : > { %v386_v7 = vpop.permute.xlu0 %385  ;;  %v384_v8 = vpop.permute.xlu1 %383 }
  0xa9   : > { %v392_v12 = vsel %vm391_vm1, %v384_v8, %v386_v7 }
  0xac   : > { %v388_v9 = vpop.permute.xlu0 %387  ;;  %v360_v10 = vpop.permute.xlu1 %359 }
  0xad   : > { %v393_v11 = vsel %vm391_vm1, %v386_v7, %v388_v9 }
  0xae   : > { %453 = vmatprep.subr.mxu0 %v393_v11 }
  0xaf   : > { %454 = vmatpush1.msra.mxu0 %v392_v12 }
  0xb0   : > { %v362_v13 = vpop.permute.xlu0 %361  ;;  %v358_v14 = vpop.permute.xlu1 %357 }
  0xb1   : > { %v367_v15 = vsel %vm365_vm2, %v360_v10, %v362_v13  ;;  %v366_v16 = vsel %vm365_vm2, %v358_v14, %v360_v10 }
  0xb2   : > { %455 = vmatprep.subr.mxu0 %v367_v15 }
  0xb3   : > { %456 = vmatpush1.msra.mxu0 %v366_v16 }
  0xb4   : > { %v390_v17 = vpop.permute.xlu0 %389  ;;  %v334_v18 = vpop.permute.xlu1 %333 }
  0xb5   : > { %v394_v19 = vsel %vm391_vm1, %v388_v9, %v390_v17 }
  0xb6   : > { %696 = vmatpush3.msra.mxu1 %v394_v19 }
  0xb7   : > { %697 = vmatprep.subr.mxu1 %v871_v2 }
  0xb8   : > { %v336_v20 = vpop.permute.xlu0 %335  ;;  %v332_v21 = vpop.permute.xlu1 %331 }
  0xb9   : > { %v341_v22 = vsel %vm339_vm3, %v334_v18, %v336_v20  ;;  %v340_v23 = vsel %vm339_vm3, %v332_v21, %v334_v18 }
  0xba   : > { %457 = vmatprep.subr.mxu0 %v341_v22 }
  0xbb   : > { %458 = vmatpush1.msra.mxu0 %v340_v23 }
  0xbc   : > { %v364_v24 = vpop.permute.xlu0 %363  ;;  %v308_v25 = vpop.permute.xlu1 %307 }
  0xbd   : > { %v368_v26 = vsel %vm365_vm2, %v362_v13, %v364_v24 }
  0xbe   : > { %698 = vmatpush3.msra.mxu1 %v368_v26 }
  0xbf   : > { %699 = vmatprep.subr.mxu1 %v871_v2 }
  0xc0   : > { %v310_v27 = vpop.permute.xlu0 %309  ;;  %v306_v28 = vpop.permute.xlu1 %305 }
  0xc1   : > { %v315_v29 = vsel %vm313_vm4, %v308_v25, %v310_v27  ;;  %v314_v30 = vsel %vm313_vm4, %v306_v28, %v308_v25 }
  0xc2   : > { %459 = vmatprep.subr.mxu0 %v315_v29 }
  0xc3   : > { %460 = vmatpush1.msra.mxu0 %v314_v30 }
  0xc4   : > { %v338_v31 = vpop.permute.xlu0 %337  ;;  %v282_v32 = vpop.permute.xlu1 %281 }
  0xc5   : > { %v342_v33 = vsel %vm339_vm3, %v336_v20, %v338_v31 }
  0xc6   : > { %700 = vmatpush3.msra.mxu1 %v342_v33 }
  0xc7   : > { %701 = vmatprep.subr.mxu1 %v871_v2 }
  0xc8   : > { %v284_v34 = vpop.permute.xlu0 %283  ;;  %v280_v35 = vpop.permute.xlu1 %279 }
  0xc9   : > { %v289_v36 = vsel %vm287_vm5, %v282_v32, %v284_v34  ;;  %v288_v37 = vsel %vm287_vm5, %v280_v35, %v282_v32 }
  0xca   : > { %461 = vmatprep.subr.mxu0 %v289_v36 }
  0xcb   : > { %462 = vmatpush1.msra.mxu0 %v288_v37 }
  0xcc   : > { %v312_v38 = vpop.permute.xlu0 %311  ;;  %v256_v39 = vpop.permute.xlu1 %255 }
  0xcd   : > { %v316_v40 = vsel %vm313_vm4, %v310_v27, %v312_v38 }
  0xce   : > { %702 = vmatpush3.msra.mxu1 %v316_v40 }
  0xcf   : > { %703 = vmatprep.subr.mxu1 %v871_v2 }
  0xd0   : > { %v258_v41 = vpop.permute.xlu0 %257  ;;  %v254_v42 = vpop.permute.xlu1 %253 }
  0xd1   : > { %v263_v43 = vsel %vm261_vm6, %v256_v39, %v258_v41  ;;  %v262_v44 = vsel %vm261_vm6, %v254_v42, %v256_v39 }
  0xd2   : > { %463 = vmatprep.subr.mxu0 %v263_v43 }
  0xd3   : > { %464 = vmatpush1.msra.mxu0 %v262_v44 }
  0xd4   : > { %v286_v45 = vpop.permute.xlu0 %285  ;;  %v230_v46 = vpop.permute.xlu1 %229 }
  0xd5   : > { %v290_v47 = vsel %vm287_vm5, %v284_v34, %v286_v45 }
  0xd6   : > { %704 = vmatpush3.msra.mxu1 %v290_v47 }
  0xd7   : > { %705 = vmatprep.subr.mxu1 %v871_v2 }
  0xd8   : > { %v232_v48 = vpop.permute.xlu0 %231  ;;  %v228_v49 = vpop.permute.xlu1 %227 }
  0xd9   : > { %v237_v50 = vsel %vm235_vm7, %v230_v46, %v232_v48  ;;  %v236_v51 = vsel %vm235_vm7, %v228_v49, %v230_v46 }
  0xda   : > { %465 = vmatprep.subr.mxu0 %v237_v50 }
  0xdb   : > { %466 = vmatpush1.msra.mxu0 %v236_v51 }
  0xdc   : > { %v260_v52 = vpop.permute.xlu0 %259  ;;  %v204_v53 = vpop.permute.xlu1 %203 }
  0xdd   : > { %v264_v54 = vsel %vm261_vm6, %v258_v41, %v260_v52 }
  0xde   : > { %706 = vmatpush3.msra.mxu1 %v264_v54 }
  0xdf   : > { %707 = vmatprep.subr.mxu1 %v871_v2 }
  0xe0   : > { %v206_v55 = vpop.permute.xlu0 %205  ;;  %v202_v56 = vpop.permute.xlu1 %201 }
  0xe1   : > { %v211_v57 = vsel %vm209_vm8, %v204_v53, %v206_v55  ;;  %v210_v58 = vsel %vm209_vm8, %v202_v56, %v204_v53 }
  0xe2   : > { %467 = vmatprep.subr.mxu0 %v211_v57 }
  0xe3   : > { %468 = vmatpush1.msra.mxu0 %v210_v58 }
  0xe4   : > { %v234_v60 = vpop.permute.xlu0 %233  ;;  %v208_v61 = vpop.permute.xlu1 %207  ;;  %469 = vmatprep.subr.mxu0 %v1009_v0 }
  0xe5   : > { %470 = vmatpush1.msra.mxu0 %v1011_v1  ;;  %v238_v62 = vsel %vm235_vm7, %v232_v48, %v234_v60  ;;  %v212_v63 = vsel %vm209_vm8, %v206_v55, %v208_v61 }
  0xe6   : > { %708 = vmatpush3.msra.mxu1 %v238_v62  ;;  %679 = vmatmul.mubr.msk.f32.vlgmr.msra.gmra.mxu0 %vm435_vm9, %v401_v59 }
  0xe7   : > { %709 = vmatprep.subr.mxu1 %v871_v2 }
  0xe8   : > { %710 = vmatpush3.msra.mxu1 %v212_v63 }
  0xe9   : > { %711 = vmatprep.subr.mxu1 %v871_v2 }
  0xea   : > { %712 = vmatpush3.msra.mxu1 %v1017_v3 }
  0xeb   : > { %714 = vmatmul.mubr.msk.f32.vlgmr.msra.gmra.mxu1 %vm435_vm9, %v401_v59 }
  0xf1   : > { %v433_v4 = vpop.permute.xlu0 %432 }
 0x1a6   : > { %v505_v0 = vpop.f32.mrf.mxu0 }
 0x1a7   : > { %v506_v5 = vadd.f32 %v505_v0, %v433_v4 }
 0x1a8   : > { %v507_v1 = vpop.f32.mrf.mxu0 }
 0x1a9   : > { %v580_v6 = vmax.f32 %v506_v5, 0.0  ;;  %v508_v7 = vadd.f32 %v507_v1, %v433_v4 }
 0x1ab   : > { %583 = vst [vmem:[%s186_s30] sm:$0xff] %v580_v6  ;;  %v581_v8 = vmax.f32 %v508_v7, 0.0  ;;  %v576_v9 = vpop.f32.mrf.mxu1 }
 0x1ac   : > { %v577_v10 = vadd.f32 %v576_v9, %v433_v4 }
 0x1ad   : > { %584 = vst [vmem:[%s186_s30 + $0x8] sm:$0xff] %v581_v8  ;;  %v715_v2 = vpop.f32.mrf.mxu1 }
 0x1ae   : > { %v582_v3 = vmax.f32 %v577_v10, 0.0 }
 0x1b0   : > { %585 = vst [vmem:[%s186_s30 + $0x10] sm:$0xff] %v582_v3 }
 0x1b1   : > { %817 = shalt.err (!%p814_p10)
}
 0x1b2   : > { %s818_s11 = scalar_lea.hbm %s599_s23, 384  ;;  %s822_s19 = scalar_lea.hbm %s1122_s3, 768 }
 0x1b3   : > { %p819_p2 = scmp.ne.s32.totalorder %s599_s23, %s818_s11  ;;  %p823_p7 = scmp.lt.s32.totalorder %s599_s23, %s1122_s3 }
 0x1b4   : > { %p824_p0 = scmp.lt.s32.totalorder %s822_s19, %s818_s11 }
 0x1b5   : > { %p820_p4 = pnand %p819_p2, %p1133_p12 }
 0x1b6   : > { %p825_p6 = por %p824_p0, %p823_p7 }
 0x1b7   : > { %p821_p9 = pneg %p820_p4 }
 0x1b9   : > { %p826_p11 = pnand %p825_p6, %p821_p9 }
 0x1bb   : > { %829 = shalt.err (!%p826_p11)
}
 0x1bc   : > { %720 = dma.vmem_to_hbm [thread:$0]  (%p1133_p12), %s602_s5, 384, %s599_s23, %s587_s6  }
 0x1bd PF: > { %s613_s26 = sand.u32 1, %s856_s12   ;;  %p1134_p13 = scmp.ne.s32.totalorder %s1128_s25, 0 }
 0x1be   : > { %p1135_p1 = scmp.ge.s32.totalorder %s868_s15, 2  ;;  %s614_s27 = scalar_lea.sflag [#allocation5], %s613_s26 }
 0x1c0   : > { %p727_p3 = pnand %p1135_p1, %p1134_p13 }
 0x1c2   : > { %p728_p5 = pneg %p727_p3 }
 0x1c4   : > { %851 = dma.done.wait (%p728_p5), %s614_s27, 384  }
 0x1c5   : > { %853 = vsyncadd (%p728_p5), %s614_s27, 4294966912  ;;  %p16_p8 = scmp.ge.s32.totalorder %s928_s18, 4   ;;  %s1136_s12 = smov %s860_s13 }
 0x1c6   : > { %s1137_s13 = smov %s864_s14  ;;  %s1138_s14 = smov %s940_s21 }
 0x1c7   : > { %s1139_s15 = smov %s928_s18  ;;  %18 = sbr.rel (!%p16_p8) target bundleno = 5 (0x5), region = 77 }
 0x1cc   :  { %619 = vsyncpa [#allocation4], 1 }
 0x1cd   :  { %621 = vsyncpa [#allocation4 + $0x1], 1 }
 0x1ce   :  { %622 = vsyncpa [#allocation5], 1 }
 0x1cf   :  { %624 = vsyncpa [#allocation5 + $0x1], 1 }

</bundles_post_ra>
